<compile_context>
chip_gen: v5e
topology: v5e:2x2
jax: 0.10.0
libtpu: 0.0.40
codegen_flags: <defaults>
</compile_context>

<pallas_src>
import numpy as np
import jax
import jax.numpy as jnp
from jax.experimental import pallas as pl
from jax.experimental.pallas import tpu as pltpu

ACTION_DIMS = [2, 16, 5, 5, 5, 4]
TOTAL = sum(ACTION_DIMS)          # 37
HIDDEN = 128
OUT_PAD = 128                     # lane-dense padded head width (multiple of 128)


def _round_up(x, m):
    return (x + m - 1) // m * m


def _cdiv(a, b):
    return -(-a // b)


def _actor_kernel(x_ref, w1_ref, b1_ref, wh_ref, bh_ref, out_ref):
    """One batch tile: feat = ReLU(x @ W1 + b1); out = feat @ Wh + bh (all heads)."""
    # In-kernel bf16 cast of the activations: free VPU work in a DMA-bound kernel,
    # saves a separate wrapper-side XLA pass over the input.
    x = x_ref[...].astype(jnp.bfloat16)
    feat = jnp.dot(x, w1_ref[...], preferred_element_type=jnp.float32)
    feat = jnp.maximum(feat + b1_ref[...], 0.0)                 # f32 VPU math (v5e-safe)
    logits = jnp.dot(feat.astype(jnp.bfloat16), wh_ref[...],
                     preferred_element_type=jnp.float32)
    # bf16 writeback halves the dominant HBM stream (the padded output slab).
    out_ref[...] = (logits + bh_ref[...]).astype(out_ref.dtype)


def ppo_actor_forward(state, params, *, block_rows=2048):
    """state: (B, state_dim) float32.  Returns list of per-head logits (float32)."""
    w1, b1, wh, bh = params["w1"], params["b1"], params["wh"], params["bh"]
    B, S = state.shape

    # Grid sizing:
    #  * b16: batch rounded up to the 16-row sublane packing unit.
    #  * n_steps: enough steps to keep each tile <= block_rows; force >=2 steps
    #    once the batch is big enough so both v7x TensorCores get work.
    #  * Padding is bounded to <16 rows per grid step (never "round B up to a
    #    multiple of 2048").
    b16 = _round_up(max(B, 1), 16)
    n_steps = max(1, _cdiv(b16, block_rows))
    if b16 >= 256:
        n_steps = max(n_steps, 2)

    if n_steps == 1:
        tb = B                       # block == full array dims: no padding needed
        padded_b = B
        x = state
    else:
        tb = _round_up(_cdiv(b16, n_steps), 16)
        padded_b = tb * n_steps
        x = jnp.pad(state, ((0, padded_b - B), (0, 0)))

    flops = 2 * padded_b * (S * HIDDEN + HIDDEN * OUT_PAD)
    bytes_accessed = (padded_b * S * 4                 # f32 input
                      + padded_b * OUT_PAD * 2         # bf16 output
                      + 2 * (S * HIDDEN + HIDDEN * OUT_PAD)   # bf16 weights
                      + 4 * (HIDDEN + OUT_PAD))        # f32 biases

    out = pl.pallas_call(
        _actor_kernel,
        out_shape=jax.ShapeDtypeStruct((padded_b, OUT_PAD), jnp.bfloat16),
        grid=(n_steps,),
        in_specs=[
            pl.BlockSpec((tb, S), lambda i: (i, 0)),          # batch-tiled activations
            pl.BlockSpec((S, HIDDEN), lambda i: (0, 0)),      # weights: VMEM-resident
            pl.BlockSpec((1, HIDDEN), lambda i: (0, 0)),
            pl.BlockSpec((HIDDEN, OUT_PAD), lambda i: (0, 0)),
            pl.BlockSpec((1, OUT_PAD), lambda i: (0, 0)),
        ],
        out_specs=pl.BlockSpec((tb, OUT_PAD), lambda i: (i, 0)),
        compiler_params=pltpu.CompilerParams(
            dimension_semantics=("parallel",)),               # megacore sharding on v7x
        cost_estimate=pl.CostEstimate(flops=flops, transcendentals=0,
                                      bytes_accessed=bytes_accessed),
    )(x, w1, b1, wh, bh)

    # TODO(synk): if the downstream consumer is per-head softmax / sampling, fuse it
    # here so only a few values per row leave VMEM instead of the padded logit slab.

    # Strip batch / lane padding, upcast to f32, split back into per-head list.
    logits = out[:B, :TOTAL].astype(jnp.float32)
    outs = []
    off = 0
    for d in ACTION_DIMS:
        outs.append(logits[:, off:off + d])
        off += d
    return outs


def init_params(key, state_dim):
    """Deterministic init mimicking nn.Linear default (uniform +/- 1/sqrt(fan_in)).

    Weights stored (in, out); head weights/biases concatenated over all six heads
    and zero-padded from 37 to OUT_PAD=128 output lanes. Matmul weights in bf16,
    biases (VPU path) in f32.
    """
    k1, k2, k3, k4 = jax.random.split(key, 4)
    lim1 = 1.0 / np.sqrt(state_dim)
    limh = 1.0 / np.sqrt(HIDDEN)
    w1 = jax.random.uniform(k1, (state_dim, HIDDEN), jnp.float32, -lim1, lim1)
    b1 = jax.random.uniform(k2, (1, HIDDEN), jnp.float32, -lim1, lim1)
    wh = jax.random.uniform(k3, (HIDDEN, TOTAL), jnp.float32, -limh, limh)
    bh = jax.random.uniform(k4, (1, TOTAL), jnp.float32, -limh, limh)
    wh = jnp.pad(wh, ((0, 0), (0, OUT_PAD - TOTAL)))
    bh = jnp.pad(bh, ((0, 0), (0, OUT_PAD - TOTAL)))
    return {
        "w1": w1.astype(jnp.bfloat16),
        "b1": b1,                                  # f32
        "wh": wh.astype(jnp.bfloat16),
        "bh": bh,                                  # f32
    }


def _reference_logits(state, params):
    """Numpy reference matching the kernel's bf16-operand / f32-accumulate math."""
    x_np = np.asarray(state.astype(jnp.bfloat16).astype(jnp.float32))
    w1_np = np.asarray(params["w1"].astype(jnp.float32))
    b1_np = np.asarray(params["b1"])
    wh_np = np.asarray(params["wh"].astype(jnp.float32))
    bh_np = np.asarray(params["bh"])
    feat = np.maximum(x_np @ w1_np + b1_np, 0.0)
    feat = np.asarray(jnp.asarray(feat).astype(jnp.bfloat16).astype(jnp.float32))
    return (feat @ wh_np + bh_np)[:, :TOTAL]


def _check(state, params, outs):
    B = state.shape[0]
    logits_ref = _reference_logits(state, params)
    off = 0
    for o, d in zip(outs, ACTION_DIMS):
        assert o.shape == (B, d), o.shape
        ref = logits_ref[:, off:off + d]
        # Tolerance accounts for the bf16 output writeback (~3 significant digits).
        assert np.allclose(np.asarray(o), ref, atol=2e-2, rtol=2e-2), \
            "mismatch vs reference"
        off += d


if __name__ == "__main__":
    key = jax.random.PRNGKey(0)
    k_param, k_x1, k_x2 = jax.random.split(key, 3)

    STATE_DIM = 32
    params = init_params(k_param, STATE_DIM)

    # Small batch: single grid step, no padding.
    B = 2
    state = jax.random.normal(k_x1, (B, STATE_DIM), dtype=jnp.float32)
    outs = jax.block_until_ready(ppo_actor_forward(state, params))
    _check(state, params, outs)

    # Larger batch: exercises the multi-step grid path (>=2 steps / megacore split).
    B2 = 300
    state2 = jax.random.normal(k_x2, (B2, STATE_DIM), dtype=jnp.float32)
    outs2 = jax.block_until_ready(ppo_actor_forward(state2, params))
    _check(state2, params, outs2)

    print("KERNEL_OK")
</pallas_src>

<mosaic_0001>
module attributes {stable_mosaic.version = 11 : i64} {
  func.func @_actor_kernel(%arg0: i32, %arg1: memref<2x32xf32, #tpu.memory_space<vmem>>, %arg2: memref<32x128xbf16, #tpu.memory_space<vmem>>, %arg3: memref<1x128xf32, #tpu.memory_space<vmem>>, %arg4: memref<128x128xbf16, #tpu.memory_space<vmem>>, %arg5: memref<1x128xf32, #tpu.memory_space<vmem>>, %arg6: memref<2x128xbf16, #tpu.memory_space<vmem>>) attributes {dimension_semantics = [#tpu.dimension_semantics<parallel>], iteration_bounds = array<i64: 1>, scalar_prefetch = 0 : i64, scratch_operands = 0 : i64, tpu.core_type = #tpu.core_type<tc>, window_params = [{transform_indices = @transform_0, window_bounds = array<i64: 2, 32>}, {pipeline_mode = #tpu.pipeline_mode<synchronous>, transform_indices = @transform_1, window_bounds = array<i64: 32, 128>}, {pipeline_mode = #tpu.pipeline_mode<synchronous>, transform_indices = @transform_2, window_bounds = array<i64: 1, 128>}, {pipeline_mode = #tpu.pipeline_mode<synchronous>, transform_indices = @transform_3, window_bounds = array<i64: 128, 128>}, {pipeline_mode = #tpu.pipeline_mode<synchronous>, transform_indices = @transform_4, window_bounds = array<i64: 1, 128>}, {transform_indices = @transform_5, window_bounds = array<i64: 2, 128>}]} {
    %c0 = arith.constant 0 : index
    %c0_0 = arith.constant 0 : index
    %0 = vector.load %arg1[%c0, %c0_0] : memref<2x32xf32, #tpu.memory_space<vmem>>, vector<2x32xf32>
    %1 = arith.truncf %0 : vector<2x32xf32> to vector<2x32xbf16>
    %c0_1 = arith.constant 0 : index
    %c0_2 = arith.constant 0 : index
    %2 = vector.load %arg2[%c0_1, %c0_2] : memref<32x128xbf16, #tpu.memory_space<vmem>>, vector<32x128xbf16>
    %cst = arith.constant dense<0.000000e+00> : vector<2x128xf32>
    %3 = tpu.matmul %1, %2, %cst {dimension_numbers = #tpu.dot_dimension_numbers<[1], [0], [0], [1], [0, 0, 1, 1], [], []>} : vector<2x32xbf16>, vector<32x128xbf16>, vector<2x128xf32> -> vector<2x128xf32>
    %c0_3 = arith.constant 0 : index
    %c0_4 = arith.constant 0 : index
    %4 = vector.load %arg3[%c0_3, %c0_4] : memref<1x128xf32, #tpu.memory_space<vmem>>, vector<1x128xf32>
    %5 = vector.broadcast %4 : vector<1x128xf32> to vector<2x128xf32>
    %6 = arith.addf %3, %5 : vector<2x128xf32>
    %cst_5 = arith.constant 0.000000e+00 : f32
    %7 = vector.broadcast %cst_5 : f32 to vector<2x128xf32>
    %8 = arith.maximumf %6, %7 : vector<2x128xf32>
    %9 = arith.truncf %8 : vector<2x128xf32> to vector<2x128xbf16>
    %c0_6 = arith.constant 0 : index
    %c0_7 = arith.constant 0 : index
    %10 = vector.load %arg4[%c0_6, %c0_7] : memref<128x128xbf16, #tpu.memory_space<vmem>>, vector<128x128xbf16>
    %cst_8 = arith.constant dense<0.000000e+00> : vector<2x128xf32>
    %11 = tpu.matmul %9, %10, %cst_8 {dimension_numbers = #tpu.dot_dimension_numbers<[1], [0], [0], [1], [0, 0, 1, 1], [], []>} : vector<2x128xbf16>, vector<128x128xbf16>, vector<2x128xf32> -> vector<2x128xf32>
    %c0_9 = arith.constant 0 : index
    %c0_10 = arith.constant 0 : index
    %12 = vector.load %arg5[%c0_9, %c0_10] : memref<1x128xf32, #tpu.memory_space<vmem>>, vector<1x128xf32>
    %13 = vector.broadcast %12 : vector<1x128xf32> to vector<2x128xf32>
    %14 = arith.addf %11, %13 : vector<2x128xf32>
    %15 = arith.truncf %14 : vector<2x128xf32> to vector<2x128xbf16>
    %c0_11 = arith.constant 0 : index
    %c0_12 = arith.constant 0 : index
    %16 = vector.load %arg6[%c0_11, %c0_12] : memref<2x128xbf16, #tpu.memory_space<vmem>>, vector<2x128xbf16>
    tpu.vector_store %arg6[%c0_11, %c0_12], %15 {strides = array<i32>} : memref<2x128xbf16, #tpu.memory_space<vmem>>, vector<2x128xbf16>,
    return
  }
  func.func @transform_0(%arg0: i32) -> (i32, i32) {
    %c0_i32 = arith.constant 0 : i32
    %c0_i32_0 = arith.constant 0 : i32
    return %arg0, %c0_i32 : i32, i32
  }
  func.func @transform_1(%arg0: i32) -> (i32, i32) {
    %c0_i32 = arith.constant 0 : i32
    %c0_i32_0 = arith.constant 0 : i32
    %c0_i32_1 = arith.constant 0 : i32
    return %c0_i32, %c0_i32_0 : i32, i32
  }
  func.func @transform_2(%arg0: i32) -> (i32, i32) {
    %c0_i32 = arith.constant 0 : i32
    %c0_i32_0 = arith.constant 0 : i32
    %c0_i32_1 = arith.constant 0 : i32
    return %c0_i32, %c0_i32_0 : i32, i32
  }
  func.func @transform_3(%arg0: i32) -> (i32, i32) {
    %c0_i32 = arith.constant 0 : i32
    %c0_i32_0 = arith.constant 0 : i32
    %c0_i32_1 = arith.constant 0 : i32
    return %c0_i32, %c0_i32_0 : i32, i32
  }
  func.func @transform_4(%arg0: i32) -> (i32, i32) {
    %c0_i32 = arith.constant 0 : i32
    %c0_i32_0 = arith.constant 0 : i32
    %c0_i32_1 = arith.constant 0 : i32
    return %c0_i32, %c0_i32_0 : i32, i32
  }
  func.func @transform_5(%arg0: i32) -> (i32, i32) {
    %c0_i32 = arith.constant 0 : i32
    %c0_i32_0 = arith.constant 0 : i32
    return %arg0, %c0_i32 : i32, i32
  }
}

</mosaic_0001>

<bundles_post_ra>
// kernel: tpu_custom_call.1
= control target key start
LH: loop header
LB: loop body
LE: loop exit
PB: predicated region body
PF: predicated region fallthrough
CT: control target
= control target key end

     0   :  { %10 = vsyncpa [#allocation3], 0  ;;  %s424_s0 = inlined_call_operand.hbm [shape: f32[2,32], index: 0, kind: input, shape index: {}]   ;;  %s425_s1 = inlined_call_operand.hbm [shape: bf16[32,128], index: 1, kind: input, shape index: {}]   ;;  %s426_s2 = inlined_call_operand.vmem [shape: f32[1,128], index: 2, kind: input, shape index: {}]   ;;  %s427_s3 = inlined_call_operand.hbm [shape: bf16[128,128], index: 3, kind: input, shape index: {}]   ;;  %s428_s4 = inlined_call_operand.vmem [shape: f32[1,128], index: 4, kind: input, shape index: {}]   ;;  %s429_s5 = inlined_call_operand.hbm [shape: bf16[2,128], index: 5, kind: output, shape index: {}]  }
   0x1   :  { %11 = vsyncpa [#allocation6], 0  ;;  %s28_s20 = sshll.u32 %s425_s1, 4  ;;  %s29_s20 = int_to_ptr.hbm [resolvable:$true] %s28_s20 }
   0x2   :  { %12 = vsyncpa [#allocation4], 0  ;;  %s370_s21 = smov [#allocation5]   ;;  %s18_s25 = sshll.u32 %s424_s0, 4  ;;  %s19_s25 = int_to_ptr.hbm [resolvable:$true] %s18_s25 }
   0x3   :  { %s30_s22 = sshll.u32 %s370_s21, 4  ;;  %s371_s26 = smov 64   ;;  %s31_s22 = int_to_ptr.vmem [resolvable:$true] %s30_s22 }
   0x4   :  { %s372_s27 = smov 4   ;;  %s373_s28 = smov [#allocation2]  }
   0x5   :  { %36 = dma.hbm_to_vmem [thread:$0]  %s29_s20, 256, %s31_s22, [#allocation6], %s371_s26, %s371_s26, %s372_s27  }
   0x6   :  { %s20_s29 = sshll.u32 %s373_s28, 4  ;;  %s43_s7 = sshll.u32 %s427_s3, 4  ;;  %s21_s29 = int_to_ptr.vmem [resolvable:$true] %s20_s29  ;;  %s44_s7 = int_to_ptr.hbm [resolvable:$true] %s43_s7 }
   0x7   :  { %23 = dma.hbm_to_vmem [thread:$0]  %s19_s25, 32, %s21_s29, [#allocation3]  }
   0x8   :  { %s374_s1 = smov [#allocation7]  }
   0x9   :  { %s45_s8 = sshll.u32 %s374_s1, 4  ;;  %s46_s8 = int_to_ptr.vmem [resolvable:$true] %s45_s8 }
   0xa   :  { %51 = dma.hbm_to_vmem [thread:$0]  %s44_s7, 1024, %s46_s8, [#allocation6], %s371_s26, %s371_s26, %s372_s27  }
   0xb   :  { %364 = dma.done.wait [#allocation3], 32  }
   0xc   :  { %365 = vsyncadd [#allocation3], 4294967264 }
   0xd   :  { %366 = dma.done.wait [#allocation6], 1280  }
   0xe   :  { %367 = vsyncadd [#allocation6], 4294966016  ;;  %v251_v0 = vld [vmem:[#allocation5 + $0x8] sm:$0xff]  ;;  %v250_v2 = vld [vmem:[#allocation5] sm:$0xff]  ;;  %vm89_vm0 = vcmask 261120   ;;  %s375_s11 = smov [#allocation8]  }
   0xf   :  { %v259_v1 = vld [vmem:[#allocation7 + $0x38] sm:$0xff]  ;;  %99 = vmatpush.bf16.msra.mxu0 %v251_v0  ;;  %v67_v3 = vld [vmem:[#allocation2] sm:$0x3]  ;;  %v258_v4 = vld [vmem:[#allocation7 + $0x30] sm:$0xff]  ;;  %s196_s12 = sshll.u32 %s375_s11, 4  ;;  %s198_s15 = sshll.u32 %s429_s5, 4  ;;  %s197_s12 = int_to_ptr.vmem [resolvable:$true] %s196_s12  ;;  %s199_s15 = int_to_ptr.hbm [resolvable:$true] %s198_s15 }
  0x10   :  { %176 = vmatpush.bf16.msra.mxu1 %v259_v1  ;;  %v68_v5 = vpack.c.bf16 %v67_v3, %v67_v3  ;;  %v257_v6 = vld [vmem:[#allocation7 + $0x28] sm:$0xff]  ;;  %v256_v7 = vld [vmem:[#allocation7 + $0x20] sm:$0xff]  ;;  %v255_v8 = vld [vmem:[#allocation7 + $0x18] sm:$0xff] }
  0x11   :  { %v254_v9 = vld [vmem:[#allocation7 + $0x10] sm:$0xff]  ;;  %v253_v10 = vld [vmem:[#allocation7 + $0x8] sm:$0xff]  ;;  %v252_v11 = vld [vmem:[#allocation7] sm:$0xff] }
  0x12   :  { %v266_v12 = vld [vmem:[%s426_s2] ss:$0 sm:$0xff] }
  0x13   :  { %100 = vmatpush.bf16.msra.mxu0 %v250_v2  ;;  %v267_v18 = vld [vmem:[%s428_s4] ss:$0 sm:$0xff] }
  0x14   :  { %177 = vmatpush.bf16.msra.mxu1 %v258_v4 }
  0x16   :  { %217 = vmatmul.msk.bf16.vlgmr.msra.gmra.mxu0 %vm89_vm0, %v68_v5 }
  0x18   :  { %178 = vmatpush.bf16.msra.mxu1 %v257_v6 }
  0x1c   :  { %179 = vmatpush.bf16.msra.mxu1 %v256_v7 }
  0x20   :  { %180 = vmatpush.bf16.msra.mxu1 %v255_v8 }
  0x24   :  { %181 = vmatpush.bf16.msra.mxu1 %v254_v9 }
  0x28   :  { %182 = vmatpush.bf16.msra.mxu1 %v253_v10 }
  0x2c   :  { %183 = vmatpush.bf16.msra.mxu1 %v252_v11 }
  0x93   :  { %v102_v13 = vpop.f32.mrf.mxu0 }
  0x94   :  { %v103_v14 = vadd.f32 %v266_v12, %v102_v13 }
  0x96   :  { %v106_v15 = vmax.f32 %v103_v14, 0.0 }
  0x98   :  { %v107_v16 = vpack.c.bf16 %v106_v15, %v106_v15 }
  0x9a   :  { %184 = vmatmul.bf16.vlgmr.msra.gmra.mxu1 %v107_v16 }
  0x9b   :  { %v104_v17 = vpop.f32.mrf.mxu0 }
 0x117   :  { %v185_v19 = vpop.f32.mrf.mxu1 }
 0x118   :  { %v186_v20 = vadd.f32 %v267_v18, %v185_v19 }
 0x11a   :  { %v189_v21 = vpack.c.bf16 %v186_v20, %v186_v20 }
 0x11c   :  { %190 = vst [vmem:[#allocation8] sm:$0x1] %v189_v21 }
 0x11d   :  { %201 = dma.vmem_to_hbm [thread:$0]  %s197_s12, 16, %s199_s15, [#allocation4]  }
 0x11f   :  { %v187_v22 = vpop.f32.mrf.mxu1 }
 0x120   :  { %368 = dma.done.wait [#allocation4], 16  }
 0x121   :  { %369 = vsyncadd [#allocation4], 4294967280 }
 0x122   :  { %206 = vsyncpa [#allocation3], 1 }
 0x123   :  { %207 = vsyncpa [#allocation6], 1 }
 0x124   :  { %208 = vsyncpa [#allocation4], 1 }

</bundles_post_ra>
